<compile_context>
chip_gen: v5e
topology: v5e:2x2
jax: 0.10.0
libtpu: 0.0.40
codegen_flags: <defaults>
</compile_context>

<pallas_src>
import numpy as np
import jax
import jax.numpy as jnp
from jax.experimental import pallas as pl
from jax.experimental.pallas import tpu as pltpu


# -----------------------------------------------------------------------------
# Fused decoder-step kernel (single invocation, no grid)
# -----------------------------------------------------------------------------
def _decoder_step_kernel(
    ids_ref,        # SMEM (B,) int32        word ids
    enc_ref,        # VMEM (T*B, H)          encoder outputs, flat row r = t*B + b
    h_ref,          # VMEM (B, H)            previous decoder hidden
    emb_tab_ref,    # VMEM (V, E)            embedding table
    selP_ref,       # VMEM (B, T*B)          selP[b, r] = [r % B == b]
    selPT_ref,      # VMEM (T*B, B)          transpose of selP
    selT_ref,       # VMEM (T*B, T)          selT[r, t] = [r // B == t]
    wh_ref,         # VMEM (H, H)            attn hidden_h weight (pre-transposed)
    ws_ref,         # VMEM (H, H)            attn hidden_s weight (pre-transposed)
    bs_ref,         # VMEM (1, H)            attn hidden_s bias
    v_ref,          # VMEM (1, H)            attn v weight (row)
    wih_e_ref,      # VMEM (3, E, H)         GRU input weights, embedding part, per gate
    wih_c_ref,      # VMEM (3, H, H)         GRU input weights, context part, per gate
    whh_ref,        # VMEM (3, H, H)         GRU hidden weights, per gate
    bih_ref,        # VMEM (3, 1, H)
    bhh_ref,        # VMEM (3, 1, H)
    wout_ref,       # VMEM (H, V)            output projection (pre-transposed)
    bout_ref,       # VMEM (1, V)
    logp_ref,       # out  (B, V)
    hnew_ref,       # out  (B, H)
    attn_ref,       # out  (B, T)
    emb_scratch,    # VMEM scratch (B, E)
):
    f32 = jnp.float32
    enc = enc_ref[...]                     # (rows, H), rows = T*B
    h = h_ref[...]                         # (B, H)
    B = h.shape[0]

    # ---- embedding gather: word ids live in SMEM, table in VMEM ----------------
    # TODO(synk): nn.Dropout(0.1) on the embedding is identity at inference.
    for b in range(B):                     # B is small & static -> unrolled
        emb_scratch[pl.ds(b, 1), :] = emb_tab_ref[pl.ds(ids_ref[b], 1), :]
    emb = emb_scratch[...]                 # (B, E)

    # ---- attention (Luong "concat") ---------------------------------------------
    # energy[r, :] = tanh(Wh @ enc[t,b] + Ws @ h[b] + bs)     with r = t*B + b
    dec_e = jnp.dot(enc, wh_ref[...], preferred_element_type=f32)            # (rows, H)
    s_e = jnp.dot(h, ws_ref[...], preferred_element_type=f32) + bs_ref[...]  # (B, H)
    s_spread = jnp.dot(selPT_ref[...], s_e, preferred_element_type=f32)      # (rows, H)
    energy = jnp.tanh(dec_e + s_spread)                                      # (rows, H)

    # score via VPU multiply + lane reduce (avoid N=1 MXU matmul)
    score = jnp.sum(energy * v_ref[...], axis=-1, keepdims=True)             # (rows, 1)
    # softmax over the src_len axis (per batch element).  A single global max is a
    # valid stabilizer and keeps the exp in the flat domain.
    m = jnp.max(score, axis=0, keepdims=True)                                # (1, 1)
    e_sc = jnp.exp(score - m)                                                # (rows, 1)

    selP = selP_ref[...]                                                     # (B, rows)
    # lane-dense (B, T) unnormalized weights: picks e_sc[t*B + b] into slot [b, t]
    w_un = jnp.dot(selP, e_sc * selT_ref[...], preferred_element_type=f32)   # (B, T)
    inv = 1.0 / jnp.sum(w_un, axis=-1, keepdims=True)                        # (B, 1)
    w_bt = w_un * inv                                                        # (B, T)
    attn_ref[...] = w_bt

    # context[b, :] = sum_t w[b, t] * enc[t, b, :]
    ctx = jnp.dot(selP, e_sc * enc, preferred_element_type=f32) * inv        # (B, H)

    # ---- GRU cell (n_layers = 1) -------------------------------------------------
    # TODO(synk): only n_layers == 1 is implemented (matches the default).
    def gates(g):
        gi = (jnp.dot(emb, wih_e_ref[g], preferred_element_type=f32)
              + jnp.dot(ctx, wih_c_ref[g], preferred_element_type=f32)
              + bih_ref[g])
        gh = jnp.dot(h, whh_ref[g], preferred_element_type=f32) + bhh_ref[g]
        return gi, gh

    gi_r, gh_r = gates(0)
    gi_z, gh_z = gates(1)
    gi_n, gh_n = gates(2)
    r = jax.nn.sigmoid(gi_r + gh_r)
    z = jax.nn.sigmoid(gi_z + gh_z)
    n = jnp.tanh(gi_n + r * gh_n)
    h_new = (1.0 - z) * n + z * h
    hnew_ref[...] = h_new

    # ---- output projection + log-softmax ----------------------------------------
    logits = jnp.dot(h_new, wout_ref[...], preferred_element_type=f32) + bout_ref[...]
    m2 = jnp.max(logits, axis=-1, keepdims=True)
    lse = jnp.log(jnp.sum(jnp.exp(logits - m2), axis=-1, keepdims=True)) + m2
    logp_ref[...] = logits - lse


# -----------------------------------------------------------------------------
# Host-side (one-time) weight re-layout
# -----------------------------------------------------------------------------
def prepare_params(params):
    """Transpose / gate-split the weights once so the kernel does x @ W directly."""
    H = params["attn_wh"].shape[0]
    E = params["embedding"].shape[1]
    w_ih = params["w_ih"].reshape(3, H, E + H)     # gate-major; cols = [emb(E), ctx(H)]
    w_hh = params["w_hh"].reshape(3, H, H)
    return {
        "embedding": params["embedding"].astype(jnp.float32),
        "attn_wh_t": params["attn_wh"].T,                          # (H, H)
        "attn_ws_t": params["attn_ws"].T,                          # (H, H)
        "attn_bs":   params["attn_bs"],                            # (1, H)
        "attn_v":    params["attn_v"],                             # (1, H)
        "w_ih_e":    jnp.transpose(w_ih[:, :, :E], (0, 2, 1)),     # (3, E, H)
        "w_ih_c":    jnp.transpose(w_ih[:, :, E:], (0, 2, 1)),     # (3, H, H)
        "w_hh_t":    jnp.transpose(w_hh, (0, 2, 1)),               # (3, H, H)
        "b_ih":      params["b_ih"].reshape(3, 1, H),
        "b_hh":      params["b_hh"].reshape(3, 1, H),
        "w_out_t":   params["w_out"].T,                            # (H, V)
        "b_out":     params["b_out"],                              # (1, V)
    }


def _selection_matrices(T, B):
    """Tiny constant 0/1 matrices mapping flat row r = t*B + b <-> (b, t)."""
    rows = T * B
    r = np.arange(rows)
    selP = (r[None, :] % B == np.arange(B)[:, None]).astype(np.float32)    # (B, rows)
    selPT = np.ascontiguousarray(selP.T)                                   # (rows, B)
    selT = (r[:, None] // B == np.arange(T)[None, :]).astype(np.float32)   # (rows, T)
    return jnp.asarray(selP), jnp.asarray(selPT), jnp.asarray(selT)


# -----------------------------------------------------------------------------
# Full decoder step (single fused pallas_call)
# -----------------------------------------------------------------------------
def rnn_decoder_forward(word_input, last_hidden, encoder_outputs, prepped):
    """
    word_input      : (B,) int32 token ids
    last_hidden     : (n_layers=1, B, H)
    encoder_outputs : (T, B, H)  PyTorch layout, consumed directly (no transpose)
    returns: (log_probs (B, V), new_hidden (1, B, H), attn_weights (B, 1, T))
    """
    T, B, H = encoder_outputs.shape
    V, E = prepped["embedding"].shape

    enc2d = encoder_outputs.reshape(T * B, H)   # free metadata reshape (no HBM copy)
    h_prev = last_hidden[-1]                    # (B, H), free squeeze
    selP, selPT, selT = _selection_matrices(T, B)

    logp, h_new, attn_w = pl.pallas_call(
        _decoder_step_kernel,
        out_shape=(jax.ShapeDtypeStruct((B, V), jnp.float32),
                   jax.ShapeDtypeStruct((B, H), jnp.float32),
                   jax.ShapeDtypeStruct((B, T), jnp.float32)),
        in_specs=(
            [pl.BlockSpec(memory_space=pltpu.MemorySpace.SMEM)]          # word ids
            + [pl.BlockSpec(memory_space=pltpu.MemorySpace.VMEM)] * 17),
        out_specs=(pl.BlockSpec(memory_space=pltpu.MemorySpace.VMEM),) * 3,
        scratch_shapes=[pltpu.VMEM((B, E), jnp.float32)],
    )(word_input.astype(jnp.int32), enc2d, h_prev, prepped["embedding"],
      selP, selPT, selT,
      prepped["attn_wh_t"], prepped["attn_ws_t"], prepped["attn_bs"], prepped["attn_v"],
      prepped["w_ih_e"], prepped["w_ih_c"], prepped["w_hh_t"],
      prepped["b_ih"], prepped["b_hh"],
      prepped["w_out_t"], prepped["b_out"])

    # free metadata reshapes for API parity with the PyTorch module
    return logp, h_new[None], attn_w[:, None, :]


# -----------------------------------------------------------------------------
# Pure-JAX reference for validation (uses the ORIGINAL, un-prepped params)
# -----------------------------------------------------------------------------
def ref_forward(word_input, last_hidden, encoder_outputs_tbH, params):
    enc = jnp.transpose(encoder_outputs_tbH, (1, 0, 2))
    h = last_hidden[-1]
    emb = params["embedding"][word_input]
    dec_e = jnp.einsum("bth,oh->bto", enc, params["attn_wh"])
    s_e = h @ params["attn_ws"].T + params["attn_bs"][0]
    energy = jnp.tanh(dec_e + s_e[:, None, :])
    score = jnp.einsum("bth,h->bt", energy, params["attn_v"][0])
    attn = jax.nn.softmax(score, axis=-1)
    ctx = jnp.einsum("bt,bth->bh", attn, enc)
    x = jnp.concatenate([emb, ctx], axis=1)
    H = h.shape[1]
    gi = x @ params["w_ih"].T + params["b_ih"][0]
    gh = h @ params["w_hh"].T + params["b_hh"][0]
    r = jax.nn.sigmoid(gi[:, :H] + gh[:, :H])
    z = jax.nn.sigmoid(gi[:, H:2 * H] + gh[:, H:2 * H])
    n = jnp.tanh(gi[:, 2 * H:] + r * gh[:, 2 * H:])
    h_new = (1.0 - z) * n + z * h
    logits = h_new @ params["w_out"].T + params["b_out"][0]
    return jax.nn.log_softmax(logits, axis=-1), h_new[None], attn[:, None, :]


if __name__ == "__main__":
    B, T = 4, 8
    H, E, V = 32, 16, 64   # hidden_size, embed_size, output_size

    key = jax.random.PRNGKey(0)
    ks = jax.random.split(key, 16)

    params = {
        "embedding": 0.1 * jax.random.normal(ks[0], (V, E), jnp.float32),
        "attn_wh":   0.1 * jax.random.normal(ks[1], (H, H), jnp.float32),
        "attn_ws":   0.1 * jax.random.normal(ks[2], (H, H), jnp.float32),
        "attn_bs":   0.1 * jax.random.normal(ks[3], (1, H), jnp.float32),
        "attn_v":    0.1 * jax.random.normal(ks[4], (1, H), jnp.float32),
        "w_ih":      0.1 * jax.random.normal(ks[5], (3 * H, H + E), jnp.float32),
        "w_hh":      0.1 * jax.random.normal(ks[6], (3 * H, H), jnp.float32),
        "b_ih":      0.1 * jax.random.normal(ks[7], (1, 3 * H), jnp.float32),
        "b_hh":      0.1 * jax.random.normal(ks[8], (1, 3 * H), jnp.float32),
        "w_out":     0.1 * jax.random.normal(ks[9], (V, H), jnp.float32),
        "b_out":     0.1 * jax.random.normal(ks[10], (1, V), jnp.float32),
    }

    word_input = jax.random.randint(ks[11], (B,), 0, V, dtype=jnp.int32)
    last_hidden = 0.1 * jax.random.normal(ks[12], (1, B, H), jnp.float32)
    encoder_outputs = 0.1 * jax.random.normal(ks[13], (T, B, H), jnp.float32)

    prepped = prepare_params(params)          # one-time host-side weight re-layout

    fwd = jax.jit(rnn_decoder_forward)
    logp, h_new, attn_w = jax.block_until_ready(
        fwd(word_input, last_hidden, encoder_outputs, prepped))

    # sanity check vs pure-JAX reference
    r_logp, r_h, r_attn = ref_forward(word_input, last_hidden, encoder_outputs, params)
    assert logp.shape == (B, V) and h_new.shape == (1, B, H) and attn_w.shape == (B, 1, T)
    assert jnp.allclose(logp, r_logp, atol=1e-5, rtol=1e-5)
    assert jnp.allclose(h_new, r_h, atol=1e-5, rtol=1e-5)
    assert jnp.allclose(attn_w, r_attn, atol=1e-5, rtol=1e-5)

    print("KERNEL_OK")
</pallas_src>

<mosaic_0001>
module attributes {stable_mosaic.version = 11 : i64} {
  func.func @_decoder_step_kernel(%arg0: memref<4xi32, #tpu.memory_space<smem>>, %arg1: memref<32x32xf32, #tpu.memory_space<vmem>>, %arg2: memref<4x32xf32, #tpu.memory_space<vmem>>, %arg3: memref<64x16xf32, #tpu.memory_space<vmem>>, %arg4: memref<4x32xf32, #tpu.memory_space<vmem>>, %arg5: memref<32x4xf32, #tpu.memory_space<vmem>>, %arg6: memref<32x8xf32, #tpu.memory_space<vmem>>, %arg7: memref<32x32xf32, #tpu.memory_space<vmem>>, %arg8: memref<32x32xf32, #tpu.memory_space<vmem>>, %arg9: memref<1x32xf32, #tpu.memory_space<vmem>>, %arg10: memref<1x32xf32, #tpu.memory_space<vmem>>, %arg11: memref<3x16x32xf32, #tpu.memory_space<vmem>>, %arg12: memref<3x32x32xf32, #tpu.memory_space<vmem>>, %arg13: memref<3x32x32xf32, #tpu.memory_space<vmem>>, %arg14: memref<3x1x32xf32, #tpu.memory_space<vmem>>, %arg15: memref<3x1x32xf32, #tpu.memory_space<vmem>>, %arg16: memref<32x64xf32, #tpu.memory_space<vmem>>, %arg17: memref<1x64xf32, #tpu.memory_space<vmem>>, %arg18: memref<4x64xf32, #tpu.memory_space<vmem>>, %arg19: memref<4x32xf32, #tpu.memory_space<vmem>>, %arg20: memref<4x8xf32, #tpu.memory_space<vmem>>, %arg21: memref<4x16xf32, #tpu.memory_space<vmem>>) attributes {dimension_semantics = [], scalar_prefetch = 0 : i64, scratch_operands = 1 : i64, tpu.core_type = #tpu.core_type<tc>} {
    %c0 = arith.constant 0 : index
    %c0_0 = arith.constant 0 : index
    %0 = vector.load %arg1[%c0, %c0_0] : memref<32x32xf32, #tpu.memory_space<vmem>>, vector<32x32xf32>
    %c0_1 = arith.constant 0 : index
    %c0_2 = arith.constant 0 : index
    %1 = vector.load %arg2[%c0_1, %c0_2] : memref<4x32xf32, #tpu.memory_space<vmem>>, vector<4x32xf32>
    %c0_3 = arith.constant 0 : index
    %2 = memref.load %arg0[%c0_3] : memref<4xi32, #tpu.memory_space<smem>>
    %3 = arith.index_cast %2 : i32 to index
    %c0_4 = arith.constant 0 : index
    %4 = vector.load %arg3[%3, %c0_4] : memref<64x16xf32, #tpu.memory_space<vmem>>, vector<1x16xf32>
    %c0_5 = arith.constant 0 : index
    %c0_6 = arith.constant 0 : index
    %5 = vector.load %arg21[%c0_5, %c0_6] : memref<4x16xf32, #tpu.memory_space<vmem>>, vector<1x16xf32>
    tpu.vector_store %arg21[%c0_5, %c0_6], %4 {strides = array<i32>} : memref<4x16xf32, #tpu.memory_space<vmem>>, vector<1x16xf32>,
    %c1 = arith.constant 1 : index
    %6 = memref.load %arg0[%c1] : memref<4xi32, #tpu.memory_space<smem>>
    %7 = arith.index_cast %6 : i32 to index
    %c0_7 = arith.constant 0 : index
    %8 = vector.load %arg3[%7, %c0_7] : memref<64x16xf32, #tpu.memory_space<vmem>>, vector<1x16xf32>
    %c1_8 = arith.constant 1 : index
    %c0_9 = arith.constant 0 : index
    %9 = vector.load %arg21[%c1_8, %c0_9] : memref<4x16xf32, #tpu.memory_space<vmem>>, vector<1x16xf32>
    tpu.vector_store %arg21[%c1_8, %c0_9], %8 {strides = array<i32>} : memref<4x16xf32, #tpu.memory_space<vmem>>, vector<1x16xf32>,
    %c2 = arith.constant 2 : index
    %10 = memref.load %arg0[%c2] : memref<4xi32, #tpu.memory_space<smem>>
    %11 = arith.index_cast %10 : i32 to index
    %c0_10 = arith.constant 0 : index
    %12 = vector.load %arg3[%11, %c0_10] : memref<64x16xf32, #tpu.memory_space<vmem>>, vector<1x16xf32>
    %c2_11 = arith.constant 2 : index
    %c0_12 = arith.constant 0 : index
    %13 = vector.load %arg21[%c2_11, %c0_12] : memref<4x16xf32, #tpu.memory_space<vmem>>, vector<1x16xf32>
    tpu.vector_store %arg21[%c2_11, %c0_12], %12 {strides = array<i32>} : memref<4x16xf32, #tpu.memory_space<vmem>>, vector<1x16xf32>,
    %c3 = arith.constant 3 : index
    %14 = memref.load %arg0[%c3] : memref<4xi32, #tpu.memory_space<smem>>
    %15 = arith.index_cast %14 : i32 to index
    %c0_13 = arith.constant 0 : index
    %16 = vector.load %arg3[%15, %c0_13] : memref<64x16xf32, #tpu.memory_space<vmem>>, vector<1x16xf32>
    %c3_14 = arith.constant 3 : index
    %c0_15 = arith.constant 0 : index
    %17 = vector.load %arg21[%c3_14, %c0_15] : memref<4x16xf32, #tpu.memory_space<vmem>>, vector<1x16xf32>
    tpu.vector_store %arg21[%c3_14, %c0_15], %16 {strides = array<i32>} : memref<4x16xf32, #tpu.memory_space<vmem>>, vector<1x16xf32>,
    %c0_16 = arith.constant 0 : index
    %c0_17 = arith.constant 0 : index
    %18 = vector.load %arg21[%c0_16, %c0_17] : memref<4x16xf32, #tpu.memory_space<vmem>>, vector<4x16xf32>
    %c0_18 = arith.constant 0 : index
    %c0_19 = arith.constant 0 : index
    %19 = vector.load %arg7[%c0_18, %c0_19] : memref<32x32xf32, #tpu.memory_space<vmem>>, vector<32x32xf32>
    %cst = arith.constant dense<0.000000e+00> : vector<32x32xf32>
    %20 = tpu.matmul %0, %19, %cst {dimension_numbers = #tpu.dot_dimension_numbers<[1], [0], [0], [1], [0, 0, 1, 1], [], []>} : vector<32x32xf32>, vector<32x32xf32>, vector<32x32xf32> -> vector<32x32xf32>
    %c0_20 = arith.constant 0 : index
    %c0_21 = arith.constant 0 : index
    %21 = vector.load %arg8[%c0_20, %c0_21] : memref<32x32xf32, #tpu.memory_space<vmem>>, vector<32x32xf32>
    %cst_22 = arith.constant dense<0.000000e+00> : vector<4x32xf32>
    %22 = tpu.matmul %1, %21, %cst_22 {dimension_numbers = #tpu.dot_dimension_numbers<[1], [0], [0], [1], [0, 0, 1, 1], [], []>} : vector<4x32xf32>, vector<32x32xf32>, vector<4x32xf32> -> vector<4x32xf32>
    %c0_23 = arith.constant 0 : index
    %c0_24 = arith.constant 0 : index
    %23 = vector.load %arg9[%c0_23, %c0_24] : memref<1x32xf32, #tpu.memory_space<vmem>>, vector<1x32xf32>
    %24 = vector.broadcast %23 : vector<1x32xf32> to vector<4x32xf32>
    %25 = arith.addf %22, %24 : vector<4x32xf32>
    %c0_25 = arith.constant 0 : index
    %c0_26 = arith.constant 0 : index
    %26 = vector.load %arg5[%c0_25, %c0_26] : memref<32x4xf32, #tpu.memory_space<vmem>>, vector<32x4xf32>
    %cst_27 = arith.constant dense<0.000000e+00> : vector<32x32xf32>
    %27 = tpu.matmul %26, %25, %cst_27 {dimension_numbers = #tpu.dot_dimension_numbers<[1], [0], [0], [1], [0, 0, 1, 1], [], []>} : vector<32x4xf32>, vector<4x32xf32>, vector<32x32xf32> -> vector<32x32xf32>
    %28 = arith.addf %20, %27 : vector<32x32xf32>
    %29 = math.tanh %28 : vector<32x32xf32>
    %c0_28 = arith.constant 0 : index
    %c0_29 = arith.constant 0 : index
    %30 = vector.load %arg10[%c0_28, %c0_29] : memref<1x32xf32, #tpu.memory_space<vmem>>, vector<1x32xf32>
    %31 = vector.broadcast %30 : vector<1x32xf32> to vector<32x32xf32>
    %32 = arith.mulf %29, %31 : vector<32x32xf32>
    %cst_30 = arith.constant dense<0.000000e+00> : vector<32xf32>
    %33 = vector.multi_reduction <add>, %32, %cst_30 [1] : vector<32x32xf32> to vector<32xf32>
    %34 = vector.shape_cast %33 : vector<32xf32> to vector<32x1xf32>
    %cst_31 = arith.constant dense<0xFF800000> : vector<1xf32>
    %35 = vector.multi_reduction <maximumf>, %34, %cst_31 [0] : vector<32x1xf32> to vector<1xf32>
    %36 = vector.shape_cast %35 : vector<1xf32> to vector<1x1xf32>
    %37 = vector.broadcast %36 : vector<1x1xf32> to vector<32x1xf32>
    %38 = arith.subf %34, %37 : vector<32x1xf32>
    %39 = math.exp %38 : vector<32x1xf32>
    %c0_32 = arith.constant 0 : index
    %c0_33 = arith.constant 0 : index
    %40 = vector.load %arg4[%c0_32, %c0_33] : memref<4x32xf32, #tpu.memory_space<vmem>>, vector<4x32xf32>
    %c0_34 = arith.constant 0 : index
    %c0_35 = arith.constant 0 : index
    %41 = vector.load %arg6[%c0_34, %c0_35] : memref<32x8xf32, #tpu.memory_space<vmem>>, vector<32x8xf32>
    %42 = vector.broadcast %39 : vector<32x1xf32> to vector<32x8xf32>
    %43 = arith.mulf %42, %41 : vector<32x8xf32>
    %cst_36 = arith.constant dense<0.000000e+00> : vector<4x8xf32>
    %44 = tpu.matmul %40, %43, %cst_36 {dimension_numbers = #tpu.dot_dimension_numbers<[1], [0], [0], [1], [0, 0, 1, 1], [], []>} : vector<4x32xf32>, vector<32x8xf32>, vector<4x8xf32> -> vector<4x8xf32>
    %cst_37 = arith.constant dense<0.000000e+00> : vector<4xf32>
    %45 = vector.multi_reduction <add>, %44, %cst_37 [1] : vector<4x8xf32> to vector<4xf32>
    %46 = vector.shape_cast %45 : vector<4xf32> to vector<4x1xf32>
    %cst_38 = arith.constant 1.000000e+00 : f32
    %47 = vector.broadcast %cst_38 : f32 to vector<4x1xf32>
    %48 = arith.divf %47, %46 : vector<4x1xf32>
    %49 = vector.broadcast %48 : vector<4x1xf32> to vector<4x8xf32>
    %50 = arith.mulf %44, %49 : vector<4x8xf32>
    %c0_39 = arith.constant 0 : index
    %c0_40 = arith.constant 0 : index
    %51 = vector.load %arg20[%c0_39, %c0_40] : memref<4x8xf32, #tpu.memory_space<vmem>>, vector<4x8xf32>
    tpu.vector_store %arg20[%c0_39, %c0_40], %50 {strides = array<i32>} : memref<4x8xf32, #tpu.memory_space<vmem>>, vector<4x8xf32>,
    %52 = vector.broadcast %39 : vector<32x1xf32> to vector<32x32xf32>
    %53 = arith.mulf %52, %0 : vector<32x32xf32>
    %cst_41 = arith.constant dense<0.000000e+00> : vector<4x32xf32>
    %54 = tpu.matmul %40, %53, %cst_41 {dimension_numbers = #tpu.dot_dimension_numbers<[1], [0], [0], [1], [0, 0, 1, 1], [], []>} : vector<4x32xf32>, vector<32x32xf32>, vector<4x32xf32> -> vector<4x32xf32>
    %55 = vector.broadcast %48 : vector<4x1xf32> to vector<4x32xf32>
    %56 = arith.mulf %54, %55 : vector<4x32xf32>
    %c0_42 = arith.constant 0 : index
    %c0_43 = arith.constant 0 : index
    %c0_44 = arith.constant 0 : index
    %57 = vector.load %arg11[%c0_42, %c0_43, %c0_44] : memref<3x16x32xf32, #tpu.memory_space<vmem>>, vector<1x16x32xf32>
    %58 = vector.shape_cast %57 : vector<1x16x32xf32> to vector<16x32xf32>
    %cst_45 = arith.constant dense<0.000000e+00> : vector<4x32xf32>
    %59 = tpu.matmul %18, %58, %cst_45 {dimension_numbers = #tpu.dot_dimension_numbers<[1], [0], [0], [1], [0, 0, 1, 1], [], []>} : vector<4x16xf32>, vector<16x32xf32>, vector<4x32xf32> -> vector<4x32xf32>
    %c0_46 = arith.constant 0 : index
    %c0_47 = arith.constant 0 : index
    %c0_48 = arith.constant 0 : index
    %60 = vector.load %arg12[%c0_46, %c0_47, %c0_48] : memref<3x32x32xf32, #tpu.memory_space<vmem>>, vector<1x32x32xf32>
    %61 = vector.shape_cast %60 : vector<1x32x32xf32> to vector<32x32xf32>
    %cst_49 = arith.constant dense<0.000000e+00> : vector<4x32xf32>
    %62 = tpu.matmul %56, %61, %cst_49 {dimension_numbers = #tpu.dot_dimension_numbers<[1], [0], [0], [1], [0, 0, 1, 1], [], []>} : vector<4x32xf32>, vector<32x32xf32>, vector<4x32xf32> -> vector<4x32xf32>
    %63 = arith.addf %59, %62 : vector<4x32xf32>
    %c0_50 = arith.constant 0 : index
    %c0_51 = arith.constant 0 : index
    %c0_52 = arith.constant 0 : index
    %64 = vector.load %arg14[%c0_50, %c0_51, %c0_52] : memref<3x1x32xf32, #tpu.memory_space<vmem>>, vector<1x1x32xf32>
    %65 = vector.shape_cast %64 : vector<1x1x32xf32> to vector<1x32xf32>
    %66 = vector.broadcast %65 : vector<1x32xf32> to vector<4x32xf32>
    %67 = arith.addf %63, %66 : vector<4x32xf32>
    %c0_53 = arith.constant 0 : index
    %c0_54 = arith.constant 0 : index
    %c0_55 = arith.constant 0 : index
    %68 = vector.load %arg13[%c0_53, %c0_54, %c0_55] : memref<3x32x32xf32, #tpu.memory_space<vmem>>, vector<1x32x32xf32>
    %69 = vector.shape_cast %68 : vector<1x32x32xf32> to vector<32x32xf32>
    %cst_56 = arith.constant dense<0.000000e+00> : vector<4x32xf32>
    %70 = tpu.matmul %1, %69, %cst_56 {dimension_numbers = #tpu.dot_dimension_numbers<[1], [0], [0], [1], [0, 0, 1, 1], [], []>} : vector<4x32xf32>, vector<32x32xf32>, vector<4x32xf32> -> vector<4x32xf32>
    %c0_57 = arith.constant 0 : index
    %c0_58 = arith.constant 0 : index
    %c0_59 = arith.constant 0 : index
    %71 = vector.load %arg15[%c0_57, %c0_58, %c0_59] : memref<3x1x32xf32, #tpu.memory_space<vmem>>, vector<1x1x32xf32>
    %72 = vector.shape_cast %71 : vector<1x1x32xf32> to vector<1x32xf32>
    %73 = vector.broadcast %72 : vector<1x32xf32> to vector<4x32xf32>
    %74 = arith.addf %70, %73 : vector<4x32xf32>
    %c1_60 = arith.constant 1 : index
    %c0_61 = arith.constant 0 : index
    %c0_62 = arith.constant 0 : index
    %75 = vector.load %arg11[%c1_60, %c0_61, %c0_62] : memref<3x16x32xf32, #tpu.memory_space<vmem>>, vector<1x16x32xf32>
    %76 = vector.shape_cast %75 : vector<1x16x32xf32> to vector<16x32xf32>
    %cst_63 = arith.constant dense<0.000000e+00> : vector<4x32xf32>
    %77 = tpu.matmul %18, %76, %cst_63 {dimension_numbers = #tpu.dot_dimension_numbers<[1], [0], [0], [1], [0, 0, 1, 1], [], []>} : vector<4x16xf32>, vector<16x32xf32>, vector<4x32xf32> -> vector<4x32xf32>
    %c1_64 = arith.constant 1 : index
    %c0_65 = arith.constant 0 : index
    %c0_66 = arith.constant 0 : index
    %78 = vector.load %arg12[%c1_64, %c0_65, %c0_66] : memref<3x32x32xf32, #tpu.memory_space<vmem>>, vector<1x32x32xf32>
    %79 = vector.shape_cast %78 : vector<1x32x32xf32> to vector<32x32xf32>
    %cst_67 = arith.constant dense<0.000000e+00> : vector<4x32xf32>
    %80 = tpu.matmul %56, %79, %cst_67 {dimension_numbers = #tpu.dot_dimension_numbers<[1], [0], [0], [1], [0, 0, 1, 1], [], []>} : vector<4x32xf32>, vector<32x32xf32>, vector<4x32xf32> -> vector<4x32xf32>
    %81 = arith.addf %77, %80 : vector<4x32xf32>
    %c1_68 = arith.constant 1 : index
    %c0_69 = arith.constant 0 : index
    %c0_70 = arith.constant 0 : index
    %82 = vector.load %arg14[%c1_68, %c0_69, %c0_70] : memref<3x1x32xf32, #tpu.memory_space<vmem>>, vector<1x1x32xf32>
    %83 = vector.shape_cast %82 : vector<1x1x32xf32> to vector<1x32xf32>
    %84 = vector.broadcast %83 : vector<1x32xf32> to vector<4x32xf32>
    %85 = arith.addf %81, %84 : vector<4x32xf32>
    %c1_71 = arith.constant 1 : index
    %c0_72 = arith.constant 0 : index
    %c0_73 = arith.constant 0 : index
    %86 = vector.load %arg13[%c1_71, %c0_72, %c0_73] : memref<3x32x32xf32, #tpu.memory_space<vmem>>, vector<1x32x32xf32>
    %87 = vector.shape_cast %86 : vector<1x32x32xf32> to vector<32x32xf32>
    %cst_74 = arith.constant dense<0.000000e+00> : vector<4x32xf32>
    %88 = tpu.matmul %1, %87, %cst_74 {dimension_numbers = #tpu.dot_dimension_numbers<[1], [0], [0], [1], [0, 0, 1, 1], [], []>} : vector<4x32xf32>, vector<32x32xf32>, vector<4x32xf32> -> vector<4x32xf32>
    %c1_75 = arith.constant 1 : index
    %c0_76 = arith.constant 0 : index
    %c0_77 = arith.constant 0 : index
    %89 = vector.load %arg15[%c1_75, %c0_76, %c0_77] : memref<3x1x32xf32, #tpu.memory_space<vmem>>, vector<1x1x32xf32>
    %90 = vector.shape_cast %89 : vector<1x1x32xf32> to vector<1x32xf32>
    %91 = vector.broadcast %90 : vector<1x32xf32> to vector<4x32xf32>
    %92 = arith.addf %88, %91 : vector<4x32xf32>
    %c2_78 = arith.constant 2 : index
    %c0_79 = arith.constant 0 : index
    %c0_80 = arith.constant 0 : index
    %93 = vector.load %arg11[%c2_78, %c0_79, %c0_80] : memref<3x16x32xf32, #tpu.memory_space<vmem>>, vector<1x16x32xf32>
    %94 = vector.shape_cast %93 : vector<1x16x32xf32> to vector<16x32xf32>
    %cst_81 = arith.constant dense<0.000000e+00> : vector<4x32xf32>
    %95 = tpu.matmul %18, %94, %cst_81 {dimension_numbers = #tpu.dot_dimension_numbers<[1], [0], [0], [1], [0, 0, 1, 1], [], []>} : vector<4x16xf32>, vector<16x32xf32>, vector<4x32xf32> -> vector<4x32xf32>
    %c2_82 = arith.constant 2 : index
    %c0_83 = arith.constant 0 : index
    %c0_84 = arith.constant 0 : index
    %96 = vector.load %arg12[%c2_82, %c0_83, %c0_84] : memref<3x32x32xf32, #tpu.memory_space<vmem>>, vector<1x32x32xf32>
    %97 = vector.shape_cast %96 : vector<1x32x32xf32> to vector<32x32xf32>
    %cst_85 = arith.constant dense<0.000000e+00> : vector<4x32xf32>
    %98 = tpu.matmul %56, %97, %cst_85 {dimension_numbers = #tpu.dot_dimension_numbers<[1], [0], [0], [1], [0, 0, 1, 1], [], []>} : vector<4x32xf32>, vector<32x32xf32>, vector<4x32xf32> -> vector<4x32xf32>
    %99 = arith.addf %95, %98 : vector<4x32xf32>
    %c2_86 = arith.constant 2 : index
    %c0_87 = arith.constant 0 : index
    %c0_88 = arith.constant 0 : index
    %100 = vector.load %arg14[%c2_86, %c0_87, %c0_88] : memref<3x1x32xf32, #tpu.memory_space<vmem>>, vector<1x1x32xf32>
    %101 = vector.shape_cast %100 : vector<1x1x32xf32> to vector<1x32xf32>
    %102 = vector.broadcast %101 : vector<1x32xf32> to vector<4x32xf32>
    %103 = arith.addf %99, %102 : vector<4x32xf32>
    %c2_89 = arith.constant 2 : index
    %c0_90 = arith.constant 0 : index
    %c0_91 = arith.constant 0 : index
    %104 = vector.load %arg13[%c2_89, %c0_90, %c0_91] : memref<3x32x32xf32, #tpu.memory_space<vmem>>, vector<1x32x32xf32>
    %105 = vector.shape_cast %104 : vector<1x32x32xf32> to vector<32x32xf32>
    %cst_92 = arith.constant dense<0.000000e+00> : vector<4x32xf32>
    %106 = tpu.matmul %1, %105, %cst_92 {dimension_numbers = #tpu.dot_dimension_numbers<[1], [0], [0], [1], [0, 0, 1, 1], [], []>} : vector<4x32xf32>, vector<32x32xf32>, vector<4x32xf32> -> vector<4x32xf32>
    %c2_93 = arith.constant 2 : index
    %c0_94 = arith.constant 0 : index
    %c0_95 = arith.constant 0 : index
    %107 = vector.load %arg15[%c2_93, %c0_94, %c0_95] : memref<3x1x32xf32, #tpu.memory_space<vmem>>, vector<1x1x32xf32>
    %108 = vector.shape_cast %107 : vector<1x1x32xf32> to vector<1x32xf32>
    %109 = vector.broadcast %108 : vector<1x32xf32> to vector<4x32xf32>
    %110 = arith.addf %106, %109 : vector<4x32xf32>
    %111 = arith.addf %67, %74 : vector<4x32xf32>
    %112 = arith.negf %111 : vector<4x32xf32>
    %113 = math.exp %112 : vector<4x32xf32>
    %cst_96 = arith.constant 1.000000e+00 : f32
    %114 = vector.broadcast %cst_96 : f32 to vector<4x32xf32>
    %115 = arith.addf %114, %113 : vector<4x32xf32>
    %116 = arith.divf %114, %115 : vector<4x32xf32>
    %117 = arith.addf %85, %92 : vector<4x32xf32>
    %118 = arith.negf %117 : vector<4x32xf32>
    %119 = math.exp %118 : vector<4x32xf32>
    %cst_97 = arith.constant 1.000000e+00 : f32
    %120 = vector.broadcast %cst_97 : f32 to vector<4x32xf32>
    %121 = arith.addf %120, %119 : vector<4x32xf32>
    %122 = arith.divf %120, %121 : vector<4x32xf32>
    %123 = arith.mulf %116, %110 : vector<4x32xf32>
    %124 = arith.addf %103, %123 : vector<4x32xf32>
    %125 = math.tanh %124 : vector<4x32xf32>
    %cst_98 = arith.constant 1.000000e+00 : f32
    %126 = vector.broadcast %cst_98 : f32 to vector<4x32xf32>
    %127 = arith.subf %126, %122 : vector<4x32xf32>
    %128 = arith.mulf %127, %125 : vector<4x32xf32>
    %129 = arith.mulf %122, %1 : vector<4x32xf32>
    %130 = arith.addf %128, %129 : vector<4x32xf32>
    %c0_99 = arith.constant 0 : index
    %c0_100 = arith.constant 0 : index
    %131 = vector.load %arg19[%c0_99, %c0_100] : memref<4x32xf32, #tpu.memory_space<vmem>>, vector<4x32xf32>
    tpu.vector_store %arg19[%c0_99, %c0_100], %130 {strides = array<i32>} : memref<4x32xf32, #tpu.memory_space<vmem>>, vector<4x32xf32>,
    %c0_101 = arith.constant 0 : index
    %c0_102 = arith.constant 0 : index
    %132 = vector.load %arg16[%c0_101, %c0_102] : memref<32x64xf32, #tpu.memory_space<vmem>>, vector<32x64xf32>
    %cst_103 = arith.constant dense<0.000000e+00> : vector<4x64xf32>
    %133 = tpu.matmul %130, %132, %cst_103 {dimension_numbers = #tpu.dot_dimension_numbers<[1], [0], [0], [1], [0, 0, 1, 1], [], []>} : vector<4x32xf32>, vector<32x64xf32>, vector<4x64xf32> -> vector<4x64xf32>
    %c0_104 = arith.constant 0 : index
    %c0_105 = arith.constant 0 : index
    %134 = vector.load %arg17[%c0_104, %c0_105] : memref<1x64xf32, #tpu.memory_space<vmem>>, vector<1x64xf32>
    %135 = vector.broadcast %134 : vector<1x64xf32> to vector<4x64xf32>
    %136 = arith.addf %133, %135 : vector<4x64xf32>
    %cst_106 = arith.constant dense<0xFF800000> : vector<4xf32>
    %137 = vector.multi_reduction <maximumf>, %136, %cst_106 [1] : vector<4x64xf32> to vector<4xf32>
    %138 = vector.shape_cast %137 : vector<4xf32> to vector<4x1xf32>
    %139 = vector.broadcast %138 : vector<4x1xf32> to vector<4x64xf32>
    %140 = arith.subf %136, %139 : vector<4x64xf32>
    %141 = math.exp %140 : vector<4x64xf32>
    %cst_107 = arith.constant dense<0.000000e+00> : vector<4xf32>
    %142 = vector.multi_reduction <add>, %141, %cst_107 [1] : vector<4x64xf32> to vector<4xf32>
    %143 = vector.shape_cast %142 : vector<4xf32> to vector<4x1xf32>
    %144 = math.log %143 : vector<4x1xf32>
    %145 = arith.addf %144, %138 : vector<4x1xf32>
    %146 = vector.broadcast %145 : vector<4x1xf32> to vector<4x64xf32>
    %147 = arith.subf %136, %146 : vector<4x64xf32>
    %c0_108 = arith.constant 0 : index
    %c0_109 = arith.constant 0 : index
    %148 = vector.load %arg18[%c0_108, %c0_109] : memref<4x64xf32, #tpu.memory_space<vmem>>, vector<4x64xf32>
    tpu.vector_store %arg18[%c0_108, %c0_109], %147 {strides = array<i32>} : memref<4x64xf32, #tpu.memory_space<vmem>>, vector<4x64xf32>,
    return
  }
}

</mosaic_0001>

<bundles_post_ra>
// kernel: rnn_decoder_forward.1
= control target key start
LH: loop header
LB: loop body
LE: loop exit
PB: predicated region body
PF: predicated region fallthrough
CT: control target
= control target key end

     0   :  { %s1649_s0 = inlined_call_operand.hbm [shape: s32[4], index: 0, kind: input, shape index: {}]   ;;  %s1650_s1 = inlined_call_operand.vmem [shape: f32[32,32], index: 1, kind: input, shape index: {}]   ;;  %s1651_s2 = inlined_call_operand.vmem [shape: f32[4,32], index: 2, kind: input, shape index: {}]   ;;  %s1652_s3 = inlined_call_operand.vmem [shape: f32[64,16], index: 3, kind: input, shape index: {}]   ;;  %s1653_s4 = inlined_call_operand.vmem [shape: f32[4,32], index: 4, kind: input, shape index: {}]   ;;  %s1654_s5 = inlined_call_operand.hbm [shape: f32[32,4], index: 5, kind: input, shape index: {}]   ;;  %s1655_s6 = inlined_call_operand.hbm [shape: f32[32,8], index: 6, kind: input, shape index: {}]   ;;  %s1656_s7 = inlined_call_operand.hbm [shape: f32[32,32], index: 7, kind: input, shape index: {}]   ;;  %s1657_s8 = inlined_call_operand.hbm [shape: f32[32,32], index: 8, kind: input, shape index: {}]   ;;  %s1658_s9 = inlined_call_operand.hbm [shape: f32[1,32], index: 9, kind: input, shape index: {}]   ;;  %s1659_s10 = inlined_call_operand.hbm [shape: f32[1,32], index: 10, kind: input, shape index: {}]   ;;  %s1660_s11 = inlined_call_operand.vmem [shape: f32[3,16,32], index: 11, kind: input, shape index: {}]   ;;  %s1661_s12 = inlined_call_operand.hbm [shape: f32[3,32,32], index: 12, kind: input, shape index: {}]   ;;  %s1662_s13 = inlined_call_operand.hbm [shape: f32[3,32,32], index: 13, kind: input, shape index: {}]   ;;  %s1663_s14 = inlined_call_operand.vmem [shape: f32[3,1,32], index: 14, kind: input, shape index: {}]   ;;  %s1664_s15 = inlined_call_operand.vmem [shape: f32[3,1,32], index: 15, kind: input, shape index: {}]   ;;  %s1665_s16 = inlined_call_operand.hbm [shape: f32[32,64], index: 16, kind: input, shape index: {}]   ;;  %s1666_s17 = inlined_call_operand.hbm [shape: f32[1,64], index: 17, kind: input, shape index: {}]   ;;  %s1667_s18 = inlined_call_operand.hbm [shape: f32[4,64], index: 18, kind: output, shape index: {0}]   ;;  %s1668_s19 = inlined_call_operand.hbm [shape: f32[4,32], index: 19, kind: output, shape index: {1}]   ;;  %s1669_s20 = inlined_call_operand.hbm [shape: f32[4,8], index: 20, kind: output, shape index: {2}]  }
   0x1   :  { %1672 = sst [smem:[#allocation35_spill]] %s1649_s0 }
   0x2   :  { %1673 = sst [smem:[#allocation36_spill]] %s1650_s1 }
   0x3   :  { %1674 = sst [smem:[#allocation37_spill]] %s1651_s2 }
   0x4   :  { %1675 = sst [smem:[#allocation38_spill]] %s1652_s3 }
   0x5   :  { %1676 = sst [smem:[#allocation39_spill]] %s1653_s4 }
   0x6   :  { %26 = vsyncpa [#allocation6], 0 }
   0x7   :  { %27 = vsyncpa [#allocation4], 0 }
   0x8   :  { %28 = vsyncpa [#allocation9], 0 }
   0x9   :  { %29 = vsyncpa [#allocation12], 0 }
   0xa   :  { %30 = vsyncpa [#allocation15], 0 }
   0xb   :  { %31 = vsyncpa [#allocation18], 0 }
   0xc   :  { %32 = vsyncpa [#allocation21], 0 }
   0xd   :  { %33 = vsyncpa [#allocation5], 0 }
   0xe   :  { %34 = vsyncpa [#allocation24], 0  ;;  %s69_s23 = sshll.u32 %s1655_s6, 4  ;;  %s1341_s24 = smov [#allocation8]   ;;  %s70_s23 = int_to_ptr.hbm [resolvable:$true] %s69_s23 }
   0xf   :  { %s71_s2 = sshll.u32 %s1341_s24, 4  ;;  %s95_s26 = sshll.u32 %s1657_s8, 4  ;;  %s72_s2 = int_to_ptr.vmem [resolvable:$true] %s71_s2  ;;  %s96_s26 = int_to_ptr.hbm [resolvable:$true] %s95_s26 }
  0x10   :  { %s1342_s27 = smov 128   ;;  %s1343_s28 = smov 8  }
  0x11   :  { %77 = dma.hbm_to_vmem [thread:$0]  %s70_s23, 512, %s72_s2, [#allocation9], %s1342_s27, %s1342_s27, %s1343_s28  }
  0x12   :  { %s1344_s4 = smov [#allocation11]   ;;  %s120_s6 = sshll.u32 %s1659_s10, 4  ;;  %s121_s6 = int_to_ptr.hbm [resolvable:$true] %s120_s6 }
  0x13   :  { %s97_s29 = sshll.u32 %s1344_s4, 4  ;;  %s145_s1 = sshll.u32 %s1662_s13, 4  ;;  %s98_s29 = int_to_ptr.vmem [resolvable:$true] %s97_s29  ;;  %s146_s1 = int_to_ptr.hbm [resolvable:$true] %s145_s1 }
  0x14   :  { %103 = dma.hbm_to_vmem [thread:$0]  %s96_s26, 512, %s98_s29, [#allocation12], %s1342_s27, %s1342_s27, %s1343_s28  }
  0x15   :  { %s1345_s22 = smov [#allocation14]   ;;  %s1346_s23 = smov [#allocation17]  }
  0x16   :  { %s122_s24 = sshll.u32 %s1345_s22, 4  ;;  %s147_s2 = sshll.u32 %s1346_s23, 4  ;;  %s123_s24 = int_to_ptr.vmem [resolvable:$true] %s122_s24  ;;  %s148_s2 = int_to_ptr.vmem [resolvable:$true] %s147_s2 }
  0x17   :  { %125 = dma.hbm_to_vmem [thread:$0]  %s121_s6, 16, %s123_s24, [#allocation15]  }
  0x18   :  { %s1677_s10 = sld [smem:[#allocation35_spill]]  ;;  %s56_s13 = sshll.u32 %s1654_s5, 4  ;;  %s57_s13 = int_to_ptr.hbm [resolvable:$true] %s56_s13 }
  0x19   :  { %153 = dma.hbm_to_vmem [thread:$0]  %s146_s1, 1536, %s148_s2, [#allocation18], %s1342_s27, %s1342_s27, %s1343_s28  }
  0x1a   :  { %s1347_s30 = smov [#allocation3]   ;;  %s1348_s0 = smov [#allocation7]  }
  0x1b   :  { %s58_s6 = sshll.u32 %s1348_s0, 4  ;;  %s82_s22 = sshll.u32 %s1656_s7, 4  ;;  %s59_s6 = int_to_ptr.vmem [resolvable:$true] %s58_s6  ;;  %s83_s22 = int_to_ptr.hbm [resolvable:$true] %s82_s22 }
  0x1c   :  { %64 = dma.hbm_to_vmem [thread:$0]  %s57_s13, 512, %s59_s6, [#allocation4], %s1342_s27, %s1342_s27, %s1343_s28  }
  0x1d   :  { %s109_s23 = sshll.u32 %s1658_s9, 4  ;;  %s1349_s5 = smov [#allocation10]   ;;  %s110_s23 = int_to_ptr.hbm [resolvable:$true] %s109_s23 }
  0x1e   :  { %s40_s4 = sshll.u32 %s1677_s10, 4  ;;  %s84_s2 = sshll.u32 %s1349_s5, 4  ;;  %s41_s4 = int_to_ptr.hbm [resolvable:$true] %s40_s4  ;;  %s85_s2 = int_to_ptr.vmem [resolvable:$true] %s84_s2 }
  0x1f   :  { %43 = dma.hbm_to_smem %s41_s4, 16, %s1347_s30, [#allocation6]  }
  0x20   :  { %90 = dma.hbm_to_vmem [thread:$0]  %s83_s22, 512, %s85_s2, [#allocation9], %s1342_s27, %s1342_s27, %s1343_s28  }
  0x21   :  { %s1350_s25 = smov [#allocation13]   ;;  %s132_s4 = sshll.u32 %s1661_s12, 4  ;;  %s133_s4 = int_to_ptr.hbm [resolvable:$true] %s132_s4 }
  0x22   :  { %s111_s7 = sshll.u32 %s1350_s25, 4  ;;  %s162_s9 = sshll.u32 %s1665_s16, 4  ;;  %s112_s7 = int_to_ptr.vmem [resolvable:$true] %s111_s7  ;;  %s163_s9 = int_to_ptr.hbm [resolvable:$true] %s162_s9 }
  0x23   :  { %114 = dma.hbm_to_vmem [thread:$0]  %s110_s23, 16, %s112_s7, [#allocation12]  }
  0x24   :  { %s1351_s13 = smov [#allocation16]   ;;  %s1352_s0 = smov [#allocation19]  }
  0x25   :  { %s134_s30 = sshll.u32 %s1351_s13, 4  ;;  %s164_s6 = sshll.u32 %s1352_s0, 4  ;;  %s135_s30 = int_to_ptr.vmem [resolvable:$true] %s134_s30  ;;  %s165_s6 = int_to_ptr.vmem [resolvable:$true] %s164_s6 }
  0x26   :  { %140 = dma.hbm_to_vmem [thread:$0]  %s133_s4, 1536, %s135_s30, [#allocation15], %s1342_s27, %s1342_s27, %s1343_s28  }
  0x27   :  { %s176_s12 = sshll.u32 %s1666_s17, 4  ;;  %s1353_s16 = smov [#allocation20]   ;;  %s177_s12 = int_to_ptr.hbm [resolvable:$true] %s176_s12 }
  0x28   :  { %170 = dma.hbm_to_vmem [thread:$0]  %s163_s9, 512, %s165_s6, [#allocation18], %s1342_s27, %s1342_s27, %s1343_s28  }
  0x29   :  { %s178_s22 = sshll.u32 %s1353_s16, 4  ;;  %s179_s22 = int_to_ptr.vmem [resolvable:$true] %s178_s22 }
  0x2a   :  { %181 = dma.hbm_to_vmem [thread:$0]  %s177_s12, 16, %s179_s22, [#allocation21]  }
  0x2b   :  { %1323 = dma.done.wait [#allocation6], 16  }
  0x2c   :  { %1324 = vsyncadd [#allocation6], 4294967280 }
  0x2d   :  { %1325 = dma.done.wait [#allocation4], 512  }
  0x2e   :  { %1326 = vsyncadd [#allocation4], 4294966784 }
  0x2f   :  { %1327 = dma.done.wait [#allocation9], 1024  }
  0x30   :  { %1328 = vsyncadd [#allocation9], 4294966272 }
  0x31   :  { %1329 = dma.done.wait [#allocation12], 528  }
  0x32   :  { %1330 = vsyncadd [#allocation12], 4294966768 }
  0x33   :  { %1331 = dma.done.wait [#allocation15], 1552  }
  0x34   :  { %1332 = vsyncadd [#allocation15], 4294965744 }
  0x35   :  { %1333 = dma.done.wait [#allocation18], 2048  }
  0x36   :  { %1334 = vsyncadd [#allocation18], 4294965248 }
  0x37   :  { %1335 = dma.done.wait [#allocation21], 16  }
  0x38   :  { %1336 = vsyncadd [#allocation21], 4294967280 }
  0x39   :  { %226 = sfence }
  0x3a   :  { %v257_v0 = vld [vmem:[#allocation11 + $0x18] sm:$0xff]  ;;  %v256_v1 = vld [vmem:[#allocation11 + $0x10] sm:$0xff]  ;;  %v255_v3 = vld [vmem:[#allocation11 + $0x8] sm:$0xff]  ;;  %s1678_s28 = sld [smem:[#allocation37_spill]]  ;;  %vm262_vm0 = vcmask 261120   ;;  %vm303_vm1 = vcmask 1043456  }
  0x3b   :  { %278 = vmatpush.msra.mxu0 %v257_v0  ;;  %v253_v2 = vld [vmem:[#allocation10 + $0x18] sm:$0xff]  ;;  %v254_v4 = vld [vmem:[#allocation11] sm:$0xff]  ;;  %v252_v5 = vld [vmem:[#allocation10 + $0x10] sm:$0xff]  ;;  %s1679_s23 = sld [smem:[#allocation36_spill]]  ;;  %vm290_vm2 = vcmask 31744   ;;  %vm454_vm3 = vcmask 60416  }
  0x3c   :  { %360 = vmatpush.msra.mxu2 %v253_v2  ;;  %v251_v7 = vld [vmem:[#allocation10 + $0x8] sm:$0xff]  ;;  %v250_v8 = vld [vmem:[#allocation10] sm:$0xff]  ;;  %v288_v18 = vld [vmem:[#allocation7 + $0x10] sm:$0xff]  ;;  %s1680_s29 = sld [smem:[#allocation39_spill]]  ;;  %vm235_vm4 = vcmask 122880   ;;  %vm529_vm5 = vcmask 130048  }
  0x3d   :  { %279 = vmatpush.msra.mxu0 %v256_v1  ;;  %v958_v13 = vld [vmem:[#allocation13] ss:$0 sm:$0xff]  ;;  %v287_v17 = vld [vmem:[#allocation7 + $0x8] sm:$0xff]  ;;  %v289_v19 = vld [vmem:[#allocation7 + $0x18] sm:$0xff]  ;;  %s232_s9 = sld [smem:[#allocation3]]  ;;  %s1355_s25 = smov [#allocation25]  }
  0x3e   :  { %361 = vmatpush.msra.mxu2 %v252_v5  ;;  %v286_v16 = vld [vmem:[#allocation7] sm:$0xff]  ;;  %v426_v2 = vld [vmem:[#allocation8 + $0x18] sm:$0xff]  ;;  %s907_s13 = sld [smem:[#allocation3 + $0x1]]  ;;  %s876_s7 = sshll.u32 %s1355_s25, 4  ;;  %s877_s7 = int_to_ptr.vmem [resolvable:$true] %s876_s7 }
  0x3f   :  { %280 = vmatpush.msra.mxu0 %v255_v3  ;;  %v959_v24 = vld [vmem:[#allocation14] ss:$0 sm:$0xff]  ;;  %s908_s30 = sld [smem:[#allocation3 + $0x2]]  ;;  %s878_s4 = sshll.u32 %s1669_s20, 4  ;;  %s879_s4 = int_to_ptr.hbm [resolvable:$true] %s878_s4 }
  0x40   :  { %v1519_v6 = vld [vmem:[%s1678_s28] sm:$0xf]  ;;  %362 = vmatpush.msra.mxu2 %v251_v7  ;;  %s909_s0 = sld [smem:[#allocation3 + $0x3]] }
  0x41   :  { %v1524_v9 = vld [vmem:[%s1679_s23] sm:$0xff]  ;;  %281 = vmatpush.msra.mxu0 %v254_v4  ;;  %v1533_v10 = vld [vmem:[%s1679_s23 + $0x8] sm:$0xff]  ;;  %v1540_v11 = vld [vmem:[%s1679_s23 + $0x10] sm:$0xff]  ;;  %s1681_s21 = sld [smem:[#allocation38_spill]] }
  0x42   :  { %910 = vmatmul.msk.f32.vlgmr.msra.gmra.mxu0 %vm262_vm0, %v1519_v6  ;;  %363 = vmatpush.msra.mxu2 %v250_v8  ;;  %v1547_v12 = vld [vmem:[%s1679_s23 + $0x18] sm:$0xff]  ;;  %s867_s23 = sshll.u32 %s1668_s19, 4  ;;  %s1356_s19 = smov [#allocation22]   ;;  %s868_s23 = int_to_ptr.hbm [resolvable:$true] %s867_s23 }
  0x43   :  { %916 = vmatmul.msk.f32.vlgmr.msra.gmra.mxu2 %vm262_vm0, %v1524_v9  ;;  %v425_v4 = vld [vmem:[#allocation8 + $0x10] sm:$0xff]  ;;  %s854_s26 = sshll.u32 %s1356_s19, 4  ;;  %s855_s26 = int_to_ptr.vmem [resolvable:$true] %s854_s26 }
  0x47   :  { %s233_s12 = scalar_lea.vmem %s1681_s21, %s232_s9  ;;  %s238_s17 = scalar_lea.vmem %s1681_s21, %s907_s13 }
  0x48   :  { %s242_s1 = scalar_lea.vmem %s1681_s21, %s908_s30  ;;  %s246_s5 = scalar_lea.vmem %s1681_s21, %s909_s0 }
  0x49   :  { %s856_s13 = sshll.u32 %s1667_s18, 4  ;;  %s857_s13 = int_to_ptr.hbm [resolvable:$true] %s856_s13 }
  0x4b   :  { %917 = vmatmul.msk.f32.gmra.mxu2 %vm262_vm0, %v1533_v10 }
  0x53   :  { %918 = vmatmul.msk.f32.gmra.mxu2 %vm262_vm0, %v1540_v11 }
  0x5b   :  { %919 = vmatmul.msk.f32.gmra.mxu2 %vm262_vm0, %v1547_v12 }
  0xbf   :  { %v283_v14 = vpop.f32.mrf.mxu0 }
  0xc0   :  { %v284_v15 = vadd.f32 %v958_v13, %v283_v14  ;;  %v424_v14 = vld [vmem:[#allocation8 + $0x8] sm:$0xff] }
  0xc2   :  { %911 = vmatpush.msk.msra.mxu1 %vm303_vm1, %v284_v15 }
  0xc3   :  { %912 = vmatmul.msk.f32.vlgmr.msra.gmra.mxu1 %vm290_vm2, %v286_v16 }
  0xc6   :  { %v365_v20 = vpop.f32.mrf.mxu2 }
  0xcb   :  { %913 = vmatmul.msk.f32.gmra.mxu1 %vm290_vm2, %v287_v17 }
  0xce   :  { %v368_v23 = vpop.f32.mrf.mxu2 }
  0xd3   :  { %914 = vmatmul.msk.f32.gmra.mxu1 %vm290_vm2, %v288_v18  ;;  %v423_v18 = vld [vmem:[#allocation8] sm:$0xff] }
  0xd6   :  { %v371_v30 = vpop.f32.mrf.mxu2 }
  0xdb   :  { %915 = vmatmul.msk.f32.gmra.mxu1 %vm290_vm2, %v289_v19 }
  0xde   :  { %v374_v36 = vpop.f32.mrf.mxu2 }
 0x140   :  { %v324_v21 = vpop.f32.mrf.mxu1 }
 0x141   :  { %v366_v22 = vadd.f32 %v365_v20, %v324_v21 }
 0x143   :  { %967 = vtanh.f32 %v366_v22 }
 0x148   :  { %v327_v25 = vpop.f32.mrf.mxu1 }
 0x149   :  { %v968_v26 = vpop.eup %967  ;;  %v369_v27 = vadd.f32 %v368_v23, %v327_v25  ;;  %v239_v23 = vld [vmem:[%s238_s17] sm:$0x1] }
 0x14a   :  { %v385_v28 = vmul.f32 %v968_v26, %v959_v24  ;;  %v247_v25 = vld [vmem:[%s246_s5] sm:$0x1]  ;;  %240 = vst.msk [vmem:[#allocation2 + $0x1] sm:$0x1] %vm235_vm4, %v239_v23  ;;  %v501_v26 = vld [vmem:[%s1660_s11 + $0x8] sm:$0xff]  ;;  %s1354_s5 = smov [#allocation23]  }
 0x14b   :  { %969 = vtanh.f32 %v369_v27  ;;  %v500_v27 = vld [vmem:[%s1660_s11] sm:$0xff]  ;;  %248 = vst.msk [vmem:[#allocation2 + $0x3] sm:$0x1] %vm235_vm4, %v247_v25  ;;  %s865_s2 = sshll.u32 %s1354_s5, 4  ;;  %s866_s2 = int_to_ptr.vmem [resolvable:$true] %s865_s2 }
 0x14c   :  { %v389_v29 = vsel %vm262_vm0, %v385_v28, 0.0  ;;  %v505_v28 = vld [vmem:[#allocation16 + $0x18] sm:$0xff] }
 0x14d   :  { %390 = vadd.xlane.f32.xlu0 %v389_v29  ;;  %v644_v29 = vld [vmem:[#allocation17 + $0x38] sm:$0xff] }
 0x14e   :  { %662 = vmatpush.msrb.mxu1 %v644_v29  ;;  %v805_v29 = vld [vmem:[#allocation19 + $0x10] sm:$0xff] }
 0x150   :  { %v330_v31 = vpop.f32.mrf.mxu1 }
 0x151   :  { %v970_v32 = vpop.eup %969  ;;  %v372_v33 = vadd.f32 %v371_v30, %v330_v31  ;;  %v593_v30 = vld [vmem:[#allocation16 + $0x38] sm:$0xff]  ;;  %v504_v31 = vld [vmem:[#allocation16 + $0x10] sm:$0xff] }
 0x152   :  { %v386_v34 = vmul.f32 %v970_v32, %v959_v24  ;;  %v503_v32 = vld [vmem:[#allocation16 + $0x8] sm:$0xff] }
 0x153   :  { %971 = vtanh.f32 %v372_v33  ;;  %v592_v33 = vld [vmem:[#allocation16 + $0x30] sm:$0xff] }
 0x154   :  { %v392_v35 = vsel %vm262_vm0, %v386_v34, 0.0 }
 0x155   :  { %393 = vadd.xlane.f32.xlu0 %v392_v35  ;;  %v591_v35 = vld [vmem:[#allocation16 + $0x28] sm:$0xff] }
 0x158   :  { %v333_v37 = vpop.f32.mrf.mxu1 }
 0x159   :  { %v972_v38 = vpop.eup %971  ;;  %v375_v39 = vadd.f32 %v374_v36, %v333_v37  ;;  %v502_v36 = vld [vmem:[#allocation16] sm:$0xff] }
 0x15a   :  { %v387_v40 = vmul.f32 %v972_v38, %v959_v24  ;;  %v590_v37 = vld [vmem:[#allocation16 + $0x20] sm:$0xff] }
 0x15b   :  { %973 = vtanh.f32 %v375_v39  ;;  %v933_v38 = vld [vmem:[%s1660_s11 + $0x28] sm:$0xff]  ;;  %v561_v39 = vld [vmem:[#allocation17 + $0x18] sm:$0xff] }
 0x15c   :  { %v395_v41 = vsel %vm262_vm0, %v387_v40, 0.0  ;;  %712 = vmatpush.msrb.mxu2 %v933_v38  ;;  %v643_v40 = vld [vmem:[#allocation17 + $0x30] sm:$0xff] }
 0x15d   :  { %396 = vadd.xlane.f32.xlu1 %v395_v41  ;;  %v677_v41 = vld [vmem:[#allocation16 + $0x58] sm:$0xff]  ;;  %663 = vmatpush.msrb.mxu1 %v643_v40 }
 0x161   :  { %v974_v42 = vpop.eup %973 }
 0x162   :  { %v388_v43 = vmul.f32 %v974_v42, %v959_v24  ;;  %v243_v24 = vld [vmem:[%s242_s1] sm:$0x1] }
 0x163   :  { %244 = vst.msk [vmem:[#allocation2 + $0x2] sm:$0x1] %vm235_vm4, %v243_v24  ;;  %v932_v42 = vld [vmem:[%s1660_s11 + $0x20] sm:$0xff] }
 0x164   :  { %v398_v44 = vsel %vm262_vm0, %v388_v43, 0.0  ;;  %v560_v43 = vld [vmem:[#allocation17 + $0x10] sm:$0xff]  ;;  %713 = vmatpush.msrb.mxu2 %v932_v42 }
 0x165   :  { %399 = vadd.xlane.f32.xlu1 %v398_v44  ;;  %v676_v44 = vld [vmem:[#allocation16 + $0x50] sm:$0xff] }
 0x1c0   :  { %v391_v45 = vpop.xlane.xlu0 %390 }
 0x1c8   :  { %v394_v47 = vpop.xlane.xlu0 %393 }
 0x1c9   :  { %v401_v49 = vmax.f32 %v391_v45, %v394_v47 }
 0x1d0   :  { %v397_v46 = vpop.xlane.xlu1 %396 }
 0x1d8   :  { %v400_v48 = vpop.xlane.xlu1 %399 }
 0x1d9   :  { %v402_v50 = vmax.f32 %v397_v46, %v400_v48 }
 0x1db   :  { %v403_v51 = vmax.f32 %v401_v49, %v402_v50  ;;  %v642_v49 = vld [vmem:[#allocation17 + $0x28] sm:$0xff] }
 0x1dc   :  { %664 = vmatpush.msrb.mxu1 %v642_v49 }
 0x1dd   :  { %v404_v52 = vrot.slane %v403_v51, 4 }
 0x1df   :  { %v405_v53 = vmax.f32 %v403_v51, %v404_v52  ;;  %v641_v51 = vld [vmem:[#allocation17 + $0x20] sm:$0xff] }
 0x1e0   :  { %665 = vmatpush.msrb.mxu1 %v641_v51 }
 0x1e1   :  { %v406_v54 = vrot.slane %v405_v53, 2  ;;  %931 = vmatmul.msk.f32.vlgmr.msrb.gmra.mxu1 %vm262_vm0, %v1519_v6 }
 0x1e3   :  { %v407_v55 = vmax.f32 %v405_v53, %v406_v54 }
 0x1e5   :  { %v408_v56 = vrot.slane %v407_v55, 1 }
 0x1e7   :  { %v409_v57 = vmax.f32 %v407_v55, %v408_v56 }
 0x1e9   :  { %v413_v58 = vsub.f32 %v400_v48, %v409_v57  ;;  %v412_v59 = vsub.f32 %v397_v46, %v409_v57  ;;  %v411_v60 = vsub.f32 %v394_v47, %v409_v57  ;;  %v410_v61 = vsub.f32 %v391_v45, %v409_v57  ;;  %v559_v45 = vld [vmem:[#allocation17 + $0x8] sm:$0xff]  ;;  %v558_v47 = vld [vmem:[#allocation17] sm:$0xff] }
 0x1ea   :  { %v675_v46 = vld [vmem:[#allocation16 + $0x48] sm:$0xff]  ;;  %v674_v48 = vld [vmem:[#allocation16 + $0x40] sm:$0xff] }
 0x1eb   :  { %v420_v62 = vmul.f32 1.442695, %v413_v58  ;;  %v418_v63 = vmul.f32 1.442695, %v412_v59  ;;  %v416_v0 = vmul.f32 1.442695, %v411_v60 }
 0x1ec   :  { %v414_v1 = vmul.f32 1.442695, %v410_v61 }
 0x1ed   :  { %975 = vpow2.f32 %v420_v62 }
 0x1ee   :  { %977 = vpow2.f32 %v418_v63 }
 0x1ef   :  { %979 = vpow2.f32 %v416_v0 }
 0x1f0   :  { %981 = vpow2.f32 %v414_v1  ;;  %v926_v1 = vld [vmem:[%s1660_s11 + $0x18] sm:$0xff] }
 0x1f3   :  { %v976_v3 = vpop.eup %975 }
 0x1f4   :  { %v978_v5 = vpop.eup %977  ;;  %v430_v7 = vmul.f32 %v976_v3, %v426_v2  ;;  %v478_v8 = vmul.f32 %v976_v3, %v1547_v12  ;;  %v422_v12 = vld [vmem:[%s1680_s29] sm:$0xf]  ;;  %v925_v2 = vld [vmem:[%s1660_s11 + $0x10] sm:$0xff] }
 0x1f5   :  { %v980_v13 = vpop.eup %979  ;;  %v429_v15 = vmul.f32 %v978_v5, %v425_v4  ;;  %v477_v16 = vmul.f32 %v978_v5, %v1540_v11  ;;  %v728_v3 = vld [vmem:[#allocation17 + $0x58] sm:$0xff]  ;;  %v727_v4 = vld [vmem:[#allocation17 + $0x50] sm:$0xff]  ;;  %v726_v5 = vld [vmem:[#allocation17 + $0x48] sm:$0xff] }
 0x1f6   :  { %446 = vmatpush.msra.mxu3 %v430_v7  ;;  %491 = vmatpush.msrb.mxu0 %v478_v8  ;;  %v982_v17 = vpop.eup %981  ;;  %v428_v19 = vmul.f32 %v980_v13, %v424_v14  ;;  %v476_v20 = vmul.f32 %v980_v13, %v1533_v10  ;;  %v725_v7 = vld [vmem:[#allocation17 + $0x40] sm:$0xff] }
 0x1f7   :  { %v427_v21 = vmul.f32 %v982_v17, %v423_v18  ;;  %v475_v22 = vmul.f32 %v982_v17, %v1524_v9  ;;  %v234_v9 = vld [vmem:[%s233_s12] sm:$0x1] }
 0x1f8   :  { %447 = vmatpush.msra.mxu3 %v429_v15  ;;  %492 = vmatpush.msrb.mxu0 %v477_v16  ;;  %236 = vst.msk [vmem:[#allocation2] sm:$0x1] %vm235_vm4, %v234_v9  ;;  %v960_v15 = vld [vmem:[%s1663_s14] ss:$0 sm:$0xff]  ;;  %vm834_vm4 = vcmask 519168  }
 0x1f9   :  { %v962_v16 = vld [vmem:[%s1664_s15] ss:$0 sm:$0xff] }
 0x1fa   :  { %448 = vmatpush.msra.mxu3 %v428_v19  ;;  %493 = vmatpush.msrb.mxu0 %v476_v20 }
 0x1fc   :  { %449 = vmatpush.msra.mxu3 %v427_v21  ;;  %494 = vmatpush.msrb.mxu0 %v475_v22  ;;  %v964_v22 = vld [vmem:[%s1664_s15 + $0x1] ss:$0 sm:$0xff] }
 0x1fd   :  { %920 = vmatmul.msk.f32.vlgmr.msra.gmra.mxu3 %vm262_vm0, %v422_v12  ;;  %921 = vmatmul.msk.f32.vlgmr.msrb.gmra.mxu0 %vm262_vm0, %v422_v12 }
 0x1fe   :  { %547 = vmatpush.msra.mxu0 %v501_v26  ;;  %521 = vmatpush.msrb.mxu3 %v505_v28  ;;  %v806_v26 = vld [vmem:[#allocation19 + $0x18] sm:$0xff] }
 0x1ff   :  { %v1586_v34 = vld [vmem:[#allocation2] sm:$0xf]  ;;  %826 = vmatpush.msra.mxu1 %v806_v26 }
 0x200   :  { %548 = vmatpush.msra.mxu0 %v500_v27  ;;  %522 = vmatpush.msrb.mxu3 %v504_v31  ;;  %v804_v31 = vld [vmem:[#allocation19 + $0x8] sm:$0xff] }
 0x201   :  { %935 = vmatmul.msk.f32.vlgmr.msrb.gmra.mxu2 %vm529_vm5, %v1586_v34  ;;  %827 = vmatpush.msra.mxu1 %v805_v29 }
 0x202   :  { %606 = vmatpush.msrb.mxu0 %v593_v30  ;;  %523 = vmatpush.msrb.mxu3 %v503_v32 }
 0x203   :  { %828 = vmatpush.msra.mxu1 %v804_v31 }
 0x204   :  { %607 = vmatpush.msrb.mxu0 %v592_v33  ;;  %524 = vmatpush.msrb.mxu3 %v502_v36  ;;  %v803_v33 = vld [vmem:[#allocation19] sm:$0xff] }
 0x205   :  { %923 = vmatmul.msk.f32.vlgmr.msra.gmra.mxu0 %vm529_vm5, %v1586_v34  ;;  %829 = vmatpush.msra.mxu1 %v803_v33 }
 0x206   :  { %608 = vmatpush.msrb.mxu0 %v591_v35  ;;  %578 = vmatpush.msra.mxu3 %v561_v39  ;;  %v965_v39 = vld [vmem:[%s1664_s15 + $0x2] ss:$0 sm:$0xff] }
 0x208   :  { %609 = vmatpush.msrb.mxu0 %v590_v37  ;;  %579 = vmatpush.msra.mxu3 %v560_v43 }
 0x20a   :  { %690 = vmatpush.msra.mxu0 %v677_v41  ;;  %580 = vmatpush.msra.mxu3 %v559_v45 }
 0x20c   :  { %691 = vmatpush.msra.mxu0 %v676_v44  ;;  %581 = vmatpush.msra.mxu3 %v558_v47  ;;  %v961_v47 = vld [vmem:[%s1663_s14 + $0x2] ss:$0 sm:$0xff] }
 0x20e   :  { %692 = vmatpush.msra.mxu0 %v675_v46 }
 0x210   :  { %693 = vmatpush.msra.mxu0 %v674_v48 }
 0x25e   :  { %v667_v12 = vpop.f32.mrf.mxu1 }
 0x25f   :  { %v668_v24 = vadd.f32 %v964_v22, %v667_v12 }
 0x27a   :  { %v496_v60 = vpop.f32.mrf.mxu0 }
 0x280   :  { %v1564_v11 = vpop.f32.mrf.mxu3 }
 0x281   :  { %v455_v10 = vsel %vm454_vm3, %v1564_v11, 0.0 }
 0x282   :  { %456 = vadd.xlane.f32.xlu2 %v455_v10  ;;  %v550_v13 = vpop.f32.mrf.mxu0 }
 0x284   :  { %v715_v38 = vpop.f32.mrf.mxu2 }
 0x2f5   :  { %v457_v50 = vpop.xlane.xlu2 %456 }
 0x2f6   :  { %983 = vrcp.f32 %v457_v50  ;;  %v469_v55 = vand.u32 2147483648, %v457_v50  ;;  %v467_v57 = vand.u32 2147483647, %v457_v50  ;;  %vm463_vm7 = vweird.f32 %v457_v50 }
 0x2f8   :  { %v470_v59 = vor.u32 1.1754944e-38, %v469_v55  ;;  %vm468_vm9 = vcmp.eq.f32.partialorder %v467_v57, 8.507059e+37 }
 0x2fc   :  { %v984_v52 = vpop.eup %983 }
 0x2fd   :  { %v459_v53 = vmul.f32 %v984_v52, %v457_v50  ;;  %vm464_vm6 = vweird.f32 %v984_v52 }
 0x2fe   :  { %vm465_vm8 = vmor %vm463_vm7, %vm464_vm6 }
 0x2ff   :  { %v460_v54 = vsub.f32 1.0, %v459_v53 }
 0x301   :  { %v461_v56 = vmul.f32 %v984_v52, %v460_v54 }
 0x303   :  { %v462_v58 = vadd.f32 %v984_v52, %v461_v56 }
 0x305   :  { %v466_v61 = vsel %vm465_vm8, %v984_v52, %v462_v58 }
 0x306   :  { %v471_v62 = vsel %vm468_vm9, %v470_v59, %v466_v61 }
 0x307   :  { %v473_v63 = vmul.f32 %v471_v62, %v1564_v11  ;;  %v499_v0 = vmul.f32 %v496_v60, %v471_v62  ;;  %v963_v11 = vld [vmem:[%s1663_s14 + $0x1] ss:$0 sm:$0xff] }
 0x309   :  { %474 = vst.msk [vmem:[#allocation25] sm:$0xf] %vm454_vm3, %v473_v63  ;;  %922 = vmatmul.msk.f32.vlgmr.msrb.gmra.mxu3 %vm262_vm0, %v499_v0  ;;  %927 = vmatmul.msk.f32.vlgmr.msrb.gmra.mxu0 %vm262_vm0, %v499_v0  ;;  %vm801_vm3 = vcmask 257024  }
 0x30a   :  { %628 = vmatpush.msrb.mxu3 %v926_v1 }
 0x30c   :  { %629 = vmatpush.msrb.mxu3 %v925_v2 }
 0x311   :  { %924 = vmatmul.msk.f32.vlgmr.msra.gmra.mxu3 %vm262_vm0, %v1519_v6  ;;  %934 = vmatmul.msk.f32.vlgmr.msra.gmra.mxu0 %vm262_vm0, %v499_v0 }
 0x312   :  { %746 = vmatpush.msra.mxu3 %v728_v3 }
 0x314   :  { %747 = vmatpush.msra.mxu3 %v727_v4 }
 0x316   :  { %748 = vmatpush.msra.mxu3 %v726_v5 }
 0x318   :  { %749 = vmatpush.msra.mxu3 %v725_v7 }
 0x319   :  { %928 = vmatmul.msk.f32.vlgmr.msrb.gmra.mxu3 %vm529_vm5, %v1586_v34 }
 0x321   :  { %938 = vmatmul.msk.f32.vlgmr.msra.gmra.mxu3 %vm262_vm0, %v1519_v6 }
 0x386   :  { %v611_v10 = vpop.f32.mrf.mxu0 }
 0x38c   :  { %v526_v8 = vpop.f32.mrf.mxu3 }
 0x38d   :  { %v551_v14 = vadd.f32 %v550_v13, %v526_v8  ;;  %v966_v8 = vld [vmem:[#allocation20] ss:$0 sm:$0xff] }
 0x38e   :  { %v695_v41 = vpop.f32.mrf.mxu0 }
 0x38f   :  { %v557_v18 = vadd.f32 %v960_v15, %v551_v14  ;;  %v716_v46 = vadd.f32 %v715_v38, %v695_v41 }
 0x391   :  { %v723_v54 = vadd.f32 %v961_v47, %v716_v46 }
 0x394   :  { %v583_v17 = vpop.f32.mrf.mxu3 }
 0x395   :  { %v584_v19 = vadd.f32 %v962_v16, %v583_v17 }
 0x397   :  { %v754_v20 = vadd.f32 %v584_v19, %v557_v18 }
 0x399   :  { %v939_v21 = vmul.f32 -1.442695, %v754_v20 }
 0x39b   :  { %985 = vpow2.f32 %v939_v21 }
 0x39c   :  { %v631_v9 = vpop.f32.mrf.mxu3 }
 0x39d   :  { %v632_v23 = vadd.f32 %v631_v9, %v611_v10 }
 0x39f   :  { %v639_v25 = vadd.f32 %v963_v11, %v632_v23 }
 0x3a1   :  { %v986_v27 = vpop.eup %985  ;;  %v774_v28 = vadd.f32 %v668_v24, %v639_v25 }
 0x3a2   :  { %v758_v30 = vadd.f32 1.0, %v986_v27 }
 0x3a3   :  { %v940_v32 = vmul.f32 -1.442695, %v774_v28 }
 0x3a4   :  { %987 = vrcp.f32 %v758_v30  ;;  %v751_v42 = vpop.f32.mrf.mxu3  ;;  %v770_v43 = vand.u32 2147483648, %v758_v30  ;;  %v768_v45 = vand.u32 2147483647, %v758_v30  ;;  %vm764_vm11 = vweird.f32 %v758_v30 }
 0x3a5   :  { %989 = vpow2.f32 %v940_v32  ;;  %v752_v48 = vadd.f32 %v965_v39, %v751_v42 }
 0x3a6   :  { %v771_v50 = vor.u32 1.1754944e-38, %v770_v43  ;;  %vm769_vm13 = vcmp.eq.f32.partialorder %v768_v45, 8.507059e+37 }
 0x3aa   :  { %v988_v34 = vpop.eup %987 }
 0x3ab   :  { %v990_v35 = vpop.eup %989  ;;  %v760_v36 = vmul.f32 %v988_v34, %v758_v30  ;;  %vm765_vm10 = vweird.f32 %v988_v34 }
 0x3ac   :  { %v778_v37 = vadd.f32 1.0, %v990_v35  ;;  %vm766_vm12 = vmor %vm764_vm11, %vm765_vm10 }
 0x3ad   :  { %v761_v40 = vsub.f32 1.0, %v760_v36 }
 0x3ae   :  { %991 = vrcp.f32 %v778_v37  ;;  %v790_v59 = vand.u32 2147483648, %v778_v37  ;;  %v788_v61 = vand.u32 2147483647, %v778_v37  ;;  %vm784_vm15 = vweird.f32 %v778_v37 }
 0x3af   :  { %v762_v44 = vmul.f32 %v988_v34, %v761_v40 }
 0x3b0   :  { %v791_v63 = vor.u32 1.1754944e-38, %v790_v59  ;;  %vm789_vm2 = vcmp.eq.f32.partialorder %v788_v61, 8.507059e+37 }
 0x3b1   :  { %v763_v49 = vadd.f32 %v988_v34, %v762_v44 }
 0x3b3   :  { %v767_v51 = vsel %vm766_vm12, %v988_v34, %v763_v49 }
 0x3b4   :  { %v992_v52 = vpop.eup %991  ;;  %v772_v53 = vsel %vm769_vm13, %v771_v50, %v767_v51 }
 0x3b5   :  { %v780_v55 = vmul.f32 %v992_v52, %v778_v37  ;;  %v794_v56 = vmul.f32 %v772_v53, %v752_v48  ;;  %vm785_vm14 = vweird.f32 %v992_v52 }
 0x3b6   :  { %vm786_vm1 = vmor %vm784_vm15, %vm785_vm14 }
 0x3b7   :  { %v781_v57 = vsub.f32 1.0, %v780_v55  ;;  %v795_v58 = vadd.f32 %v794_v56, %v723_v54 }
 0x3b9   :  { %v782_v60 = vmul.f32 %v992_v52, %v781_v57  ;;  %993 = vtanh.f32 %v795_v58 }
 0x3bb   :  { %v783_v62 = vadd.f32 %v992_v52, %v782_v60 }
 0x3bd   :  { %v787_v0 = vsel %vm786_vm1, %v992_v52, %v783_v62 }
 0x3be   :  { %v792_v1 = vsel %vm789_vm2, %v791_v63, %v787_v0 }
 0x3bf   :  { %v994_v2 = vpop.eup %993  ;;  %v797_v3 = vsub.f32 1.0, %v792_v1  ;;  %v799_v5 = vmul.f32 %v792_v1, %v1519_v6 }
 0x3c1   :  { %v798_v4 = vmul.f32 %v994_v2, %v797_v3 }
 0x3c3   :  { %v800_v7 = vadd.f32 %v799_v5, %v798_v4 }
 0x3c5   :  { %941 = vmatmul.msk.f32.vlgmr.msra.gmra.mxu1 %vm262_vm0, %v800_v7  ;;  %802 = vst.msk [vmem:[#allocation23] sm:$0xf] %vm801_vm3, %v800_v7 }
 0x3c6   :  { %870 = dma.vmem_to_hbm [thread:$0]  %s866_s2, 64, %s868_s23, [#allocation24]  }
 0x3c7   :  { %881 = dma.vmem_to_hbm [thread:$0]  %s877_s7, 64, %s879_s4, [#allocation24]  }
 0x442   :  { %v831_v13 = vpop.f32.mrf.mxu1 }
 0x443   :  { %v832_v14 = vadd.f32 %v966_v8, %v831_v13 }
 0x445   :  { %v835_v15 = vsel %vm834_vm4, %v832_v14, -inf }
 0x446   :  { %836 = vmax.xlane.f32.xlu2 %v835_v15 }
 0x4b9   :  { %v837_v16 = vpop.xlane.xlu2 %836 }
 0x4ba   :  { %v838_v17 = vsub.f32 %v832_v14, %v837_v16 }
 0x4bc   :  { %v839_v18 = vmul.f32 1.442695, %v838_v17 }
 0x4be   :  { %995 = vpow2.f32 %v839_v18 }
 0x4c4   :  { %v996_v6 = vpop.eup %995 }
 0x4c5   :  { %v841_v19 = vsel %vm834_vm4, %v996_v6, 0.0 }
 0x4c6   :  { %842 = vadd.xlane.f32.xlu0 %v841_v19 }
 0x539   :  { %v843_v20 = vpop.xlane.xlu0 %842 }
 0x53a   :  { %997 = vlog2.f32 %v843_v20 }
 0x540   :  { %v998_v21 = vpop.eup %997 }
 0x541   :  { %v845_v22 = vmul.f32 0.6931472, %v998_v21 }
 0x543   :  { %v846_v12 = vadd.f32 %v845_v22, %v837_v16 }
 0x545   :  { %v847_v11 = vsub.f32 %v832_v14, %v846_v12 }
 0x547   :  { %848 = vst.msk [vmem:[#allocation22] sm:$0xf] %vm834_vm4, %v847_v11 }
 0x548   :  { %859 = dma.vmem_to_hbm [thread:$0]  %s855_s26, 64, %s857_s13, [#allocation5]  }
 0x549   :  { %1337 = dma.done.wait [#allocation5], 64  }
 0x54a   :  { %1338 = vsyncadd [#allocation5], 4294967232 }
 0x54b   :  { %1339 = dma.done.wait [#allocation24], 128  }
 0x54c   :  { %1340 = vsyncadd [#allocation24], 4294967168 }
 0x54d   :  { %894 = vsyncpa [#allocation4], 1 }
 0x54e   :  { %895 = vsyncpa [#allocation9], 1 }
 0x54f   :  { %896 = vsyncpa [#allocation12], 1 }
 0x550   :  { %897 = vsyncpa [#allocation15], 1 }
 0x551   :  { %898 = vsyncpa [#allocation18], 1 }
 0x552   :  { %899 = vsyncpa [#allocation21], 1 }
 0x553   :  { %900 = vsyncpa [#allocation5], 1 }
 0x554   :  { %901 = vsyncpa [#allocation24], 1 }
 0x555   :  { %902 = vsyncpa [#allocation6], 1 }

</bundles_post_ra>
